<compile_context>
chip_gen: v7x
topology: tpu7x:2x2x1
jax: 0.10.0
libtpu: 0.0.40
codegen_flags: <defaults>
</compile_context>

<pallas_src>
import functools

import jax
import jax.numpy as jnp
from jax import lax
from jax.experimental import pallas as pl
from jax.experimental.pallas import tpu as pltpu

_NEG_INF = -1e30


def _round_up(x, m):
    return (x + m - 1) // m * m


def _fused_table(emb_ref, w_ref, b_ref):
    """table[v, u] = <emb[v], :>.<w[u], :> + b[u]   -> (Vp, Vp) f32."""
    return lax.dot_general(
        emb_ref[...], w_ref[...],
        dimension_numbers=(((1,), (1,)), ((), ())),   # contract C, no transpose
        preferred_element_type=jnp.float32) + b_ref[...]


# ---------------------------------------------------------------------------
# Kernel A: logits only (gridded over BT tiles, emb/w/b resident, table fused)
# ---------------------------------------------------------------------------
def _logits_kernel(idx_ref, emb_ref, w_ref, b_ref, logits_ref):
    table = _fused_table(emb_ref, w_ref, b_ref)                 # (Vp, Vp)
    tile = idx_ref.shape[0]
    Vp = table.shape[1]
    cols = lax.broadcasted_iota(jnp.int32, (tile, Vp), 1)
    one_hot = (idx_ref[...] == cols).astype(jnp.float32)        # (tile, Vp)
    logits_ref[...] = jnp.dot(one_hot, table,
                              preferred_element_type=jnp.float32)


# ---------------------------------------------------------------------------
# Kernel B: logits + per-row NLL partials (parallel-safe, reduced in wrapper)
# ---------------------------------------------------------------------------
def _loss_kernel(idx_ref, tgt_ref, emb_ref, w_ref, b_ref, logits_ref, nll_ref):
    table = _fused_table(emb_ref, w_ref, b_ref)                 # (Vp, Vp)
    tile = idx_ref.shape[0]
    Vp = table.shape[1]
    cols = lax.broadcasted_iota(jnp.int32, (tile, Vp), 1)
    one_hot = (idx_ref[...] == cols).astype(jnp.float32)
    logits = jnp.dot(one_hot, table, preferred_element_type=jnp.float32)
    logits_ref[...] = logits

    # cross-entropy per row without materializing full log-probs:
    #   nll_row = lse_row - logits[row, target[row]]
    m = jnp.max(logits, axis=-1, keepdims=True)
    lse = m + jnp.log(jnp.sum(jnp.exp(logits - m), axis=-1, keepdims=True))
    picked = jnp.sum(jnp.where(tgt_ref[...] == cols, logits, 0.0),
                     axis=-1, keepdims=True)
    nll_ref[...] = lse - picked                                  # (tile, 1)


# ---------------------------------------------------------------------------
# Wrapper: matches Bigram.forward semantics
# ---------------------------------------------------------------------------
def bigram_forward(idx, emb, w, b, targets=None, *,
                   block_bt_logits=4096, block_bt_loss=2048):
    """Returns (logits, loss).  logits is (B, T, V) if targets is None,
    else (B*T, V); loss is a scalar or None — matching the torch module."""
    B, T = idx.shape
    V, C = emb.shape
    BT = B * T

    Vp = _round_up(V, 128)                          # lane-dense vocab
    block_bt = block_bt_loss if targets is not None else block_bt_logits
    tile = min(_round_up(block_bt, 8), _round_up(BT, 8))
    BT_pad = _round_up(BT, tile)
    grid = (BT_pad // tile,)
    n_steps = grid[0]

    # wrapper-side layout plumbing (cheap pads; padded vocab bias = -inf so
    # padded columns vanish in the LSE)
    emb_p = jnp.zeros((Vp, C), jnp.float32).at[:V].set(emb.astype(jnp.float32))
    w_p = jnp.zeros((Vp, C), jnp.float32).at[:V].set(w.astype(jnp.float32))
    b_p = jnp.full((1, Vp), _NEG_INF, jnp.float32).at[0, :V].set(
        b.astype(jnp.float32))

    idx_flat = jnp.zeros((BT_pad, 1), jnp.int32).at[:BT, 0].set(
        idx.reshape(BT).astype(jnp.int32))

    idx_spec = pl.BlockSpec((tile, 1), lambda i: (i, 0))
    emb_spec = pl.BlockSpec((Vp, C), lambda i: (0, 0))      # resident
    w_spec = pl.BlockSpec((Vp, C), lambda i: (0, 0))        # resident
    b_spec = pl.BlockSpec((1, Vp), lambda i: (0, 0))        # resident
    logits_spec = pl.BlockSpec((tile, Vp), lambda i: (i, 0))

    table_flops = 2 * n_steps * Vp * C * Vp
    gather_flops = 2 * BT_pad * Vp * Vp
    param_bytes = n_steps * (2 * Vp * C + Vp) * 4
    logits_bytes = BT_pad * Vp * 4

    if targets is None:
        cost = pl.CostEstimate(
            flops=table_flops + gather_flops,
            transcendentals=0,
            bytes_accessed=logits_bytes + BT_pad * 4 + param_bytes)
        logits_pad = pl.pallas_call(
            _logits_kernel,
            out_shape=jax.ShapeDtypeStruct((BT_pad, Vp), jnp.float32),
            grid_spec=pltpu.PrefetchScalarGridSpec(
                num_scalar_prefetch=0,
                grid=grid,
                in_specs=[idx_spec, emb_spec, w_spec, b_spec],
                out_specs=logits_spec),
            compiler_params=pltpu.CompilerParams(
                dimension_semantics=("parallel",)),
            cost_estimate=cost,
        )(idx_flat, emb_p, w_p, b_p)
        logits = logits_pad[:BT, :V].reshape(B, T, V)
        return logits, None

    tgt_flat = jnp.zeros((BT_pad, 1), jnp.int32).at[:BT, 0].set(
        targets.reshape(BT).astype(jnp.int32))

    cost = pl.CostEstimate(
        flops=table_flops + gather_flops + 6 * BT_pad * Vp,
        transcendentals=BT_pad * Vp + BT_pad,           # exp + log
        bytes_accessed=logits_bytes + 3 * BT_pad * 4 + param_bytes)

    logits_pad, nll_pad = pl.pallas_call(
        _loss_kernel,
        out_shape=(jax.ShapeDtypeStruct((BT_pad, Vp), jnp.float32),
                   jax.ShapeDtypeStruct((BT_pad, 1), jnp.float32)),
        grid_spec=pltpu.PrefetchScalarGridSpec(
            num_scalar_prefetch=0,
            grid=grid,
            in_specs=[idx_spec, idx_spec, emb_spec, w_spec, b_spec],
            out_specs=(logits_spec, pl.BlockSpec((tile, 1), lambda i: (i, 0)))),
        compiler_params=pltpu.CompilerParams(
            dimension_semantics=("parallel",)),
        cost_estimate=cost,
    )(idx_flat, tgt_flat, emb_p, w_p, b_p)

    logits = logits_pad[:BT, :V]
    loss = jnp.sum(nll_pad[:BT, 0]) / BT          # padded rows sliced away
    return logits, loss


# ---------------------------------------------------------------------------
# Pure-JAX reference (mirrors the torch module)
# ---------------------------------------------------------------------------
def _reference(idx, emb, w, b, targets=None):
    tok_emb = emb[idx]                      # (B, T, C)
    logits = tok_emb @ w.T + b              # (B, T, V)
    if targets is None:
        return logits, None
    B, T, V = logits.shape
    logits = logits.reshape(B * T, V)
    t = targets.reshape(B * T)
    logp = jax.nn.log_softmax(logits, axis=-1)
    loss = -jnp.mean(logp[jnp.arange(B * T), t])
    return logits, loss


if __name__ == "__main__":
    vocab_size, n_embd = 65, 32

    key = jax.random.PRNGKey(0)
    k_emb, k_w, k_b, k_data = jax.random.split(key, 4)

    emb = jax.random.normal(k_emb, (vocab_size, n_embd), dtype=jnp.float32)
    w = jax.random.normal(k_w, (vocab_size, n_embd), dtype=jnp.float32) * 0.1
    b = jax.random.normal(k_b, (vocab_size,), dtype=jnp.float32) * 0.1

    # (B, T, block_bt override): default (single tile), tiny multi-step grid,
    # and a shape that exercises BT padding.
    for (B, T, blk) in [(2, 8, None), (2, 8, 8), (3, 5, None)]:
        ki, kt = jax.random.split(jax.random.fold_in(k_data, 100 * B + T), 2)
        idx = jax.random.randint(ki, (B, T), 0, vocab_size, dtype=jnp.int32)
        targets = jax.random.randint(kt, (B, T), 0, vocab_size,
                                     dtype=jnp.int32)
        kwargs = {} if blk is None else dict(block_bt_logits=blk,
                                             block_bt_loss=blk)

        # targets=None path
        logits_nt, loss_nt = bigram_forward(idx, emb, w, b, targets=None,
                                            **kwargs)
        jax.block_until_ready(logits_nt)
        ref_logits_nt, _ = _reference(idx, emb, w, b, None)
        assert logits_nt.shape == (B, T, vocab_size)
        assert jnp.allclose(logits_nt, ref_logits_nt, atol=1e-4, rtol=1e-4)
        assert loss_nt is None

        # targets path (logits flattened to (B*T, V) like the torch module)
        logits, loss = bigram_forward(idx, emb, w, b, targets=targets,
                                      **kwargs)
        jax.block_until_ready((logits, loss))
        ref_logits, ref_loss = _reference(idx, emb, w, b, targets)
        assert logits.shape == (B * T, vocab_size)
        assert jnp.allclose(logits, ref_logits, atol=1e-4, rtol=1e-4)
        assert jnp.allclose(loss, ref_loss, atol=1e-4, rtol=1e-4)

    print("KERNEL_OK")
</pallas_src>

<mosaic_0001>
module attributes {stable_mosaic.version = 11 : i64} {
  func.func @_logits_kernel(%arg0: i32, %arg1: memref<16x1xi32, #tpu.memory_space<vmem>>, %arg2: memref<128x32xf32, #tpu.memory_space<vmem>>, %arg3: memref<128x32xf32, #tpu.memory_space<vmem>>, %arg4: memref<1x128xf32, #tpu.memory_space<vmem>>, %arg5: memref<16x128xf32, #tpu.memory_space<vmem>>) attributes {dimension_semantics = [#tpu.dimension_semantics<parallel>], iteration_bounds = array<i64: 1>, scalar_prefetch = 0 : i64, scratch_operands = 0 : i64, tpu.core_type = #tpu.core_type<tc>, window_params = [{transform_indices = @transform_0, window_bounds = array<i64: 16, 1>}, {pipeline_mode = #tpu.pipeline_mode<synchronous>, transform_indices = @transform_1, window_bounds = array<i64: 128, 32>}, {pipeline_mode = #tpu.pipeline_mode<synchronous>, transform_indices = @transform_2, window_bounds = array<i64: 128, 32>}, {pipeline_mode = #tpu.pipeline_mode<synchronous>, transform_indices = @transform_3, window_bounds = array<i64: 1, 128>}, {transform_indices = @transform_4, window_bounds = array<i64: 16, 128>}]} {
    %c0 = arith.constant 0 : index
    %c0_0 = arith.constant 0 : index
    %0 = vector.load %arg2[%c0, %c0_0] : memref<128x32xf32, #tpu.memory_space<vmem>>, vector<128x32xf32>
    %c0_1 = arith.constant 0 : index
    %c0_2 = arith.constant 0 : index
    %1 = vector.load %arg3[%c0_1, %c0_2] : memref<128x32xf32, #tpu.memory_space<vmem>>, vector<128x32xf32>
    %cst = arith.constant dense<0.000000e+00> : vector<128x128xf32>
    %2 = tpu.matmul %0, %1, %cst {dimension_numbers = #tpu.dot_dimension_numbers<[1], [1], [0], [0], [0, 0, 1, 0], [], []>} : vector<128x32xf32>, vector<128x32xf32>, vector<128x128xf32> -> vector<128x128xf32>
    %c0_3 = arith.constant 0 : index
    %c0_4 = arith.constant 0 : index
    %3 = vector.load %arg4[%c0_3, %c0_4] : memref<1x128xf32, #tpu.memory_space<vmem>>, vector<1x128xf32>
    %4 = vector.broadcast %3 : vector<1x128xf32> to vector<128x128xf32>
    %5 = arith.addf %2, %4 : vector<128x128xf32>
    %6 = tpu.iota {dimensions = array<i32: 1>} : vector<16x128xi32>
    %c0_5 = arith.constant 0 : index
    %c0_6 = arith.constant 0 : index
    %7 = vector.load %arg1[%c0_5, %c0_6] : memref<16x1xi32, #tpu.memory_space<vmem>>, vector<16x1xi32>
    %8 = vector.broadcast %7 : vector<16x1xi32> to vector<16x128xi32>
    %9 = arith.cmpi eq, %8, %6 : vector<16x128xi32>
    %10 = arith.extui %9 : vector<16x128xi1> to vector<16x128xi32>
    %11 = arith.sitofp %10 : vector<16x128xi32> to vector<16x128xf32>
    %cst_7 = arith.constant dense<0.000000e+00> : vector<16x128xf32>
    %12 = tpu.matmul %11, %5, %cst_7 {dimension_numbers = #tpu.dot_dimension_numbers<[1], [0], [0], [1], [0, 0, 1, 1], [], []>} : vector<16x128xf32>, vector<128x128xf32>, vector<16x128xf32> -> vector<16x128xf32>
    %c0_8 = arith.constant 0 : index
    %c0_9 = arith.constant 0 : index
    %13 = vector.load %arg5[%c0_8, %c0_9] : memref<16x128xf32, #tpu.memory_space<vmem>>, vector<16x128xf32>
    tpu.vector_store %arg5[%c0_8, %c0_9], %12 {strides = array<i32>} : memref<16x128xf32, #tpu.memory_space<vmem>>, vector<16x128xf32>,
    return
  }
  func.func @transform_0(%arg0: i32) -> (i32, i32) {
    %c0_i32 = arith.constant 0 : i32
    %c0_i32_0 = arith.constant 0 : i32
    return %arg0, %c0_i32 : i32, i32
  }
  func.func @transform_1(%arg0: i32) -> (i32, i32) {
    %c0_i32 = arith.constant 0 : i32
    %c0_i32_0 = arith.constant 0 : i32
    %c0_i32_1 = arith.constant 0 : i32
    return %c0_i32, %c0_i32_0 : i32, i32
  }
  func.func @transform_2(%arg0: i32) -> (i32, i32) {
    %c0_i32 = arith.constant 0 : i32
    %c0_i32_0 = arith.constant 0 : i32
    %c0_i32_1 = arith.constant 0 : i32
    return %c0_i32, %c0_i32_0 : i32, i32
  }
  func.func @transform_3(%arg0: i32) -> (i32, i32) {
    %c0_i32 = arith.constant 0 : i32
    %c0_i32_0 = arith.constant 0 : i32
    %c0_i32_1 = arith.constant 0 : i32
    return %c0_i32, %c0_i32_0 : i32, i32
  }
  func.func @transform_4(%arg0: i32) -> (i32, i32) {
    %c0_i32 = arith.constant 0 : i32
    %c0_i32_0 = arith.constant 0 : i32
    return %arg0, %c0_i32 : i32, i32
  }
}

</mosaic_0001>

<bundles_post_ra>
// kernel: tpu_custom_call.1
= control target key start
LH: loop header
LB: loop body
LE: loop exit
PB: predicated region body
PF: predicated region fallthrough
CT: control target
= control target key end

     0   :  { %vm57_vm0 = vcmask 261120   ;;  %v696_v6 = vmov 0   ;;  %s901_s0 = inlined_call_operand.vmem [shape: s32[16,1], index: 0, kind: input, shape index: {}]   ;;  %s902_s1 = inlined_call_operand.vmem [shape: f32[128,32], index: 1, kind: input, shape index: {}]   ;;  %s903_s2 = inlined_call_operand.vmem [shape: f32[128,32], index: 2, kind: input, shape index: {}]   ;;  %s904_s3 = inlined_call_operand.vmem [shape: f32[1,128], index: 3, kind: input, shape index: {}]   ;;  %s905_s4 = inlined_call_operand.hbm [shape: f32[16,128], index: 4, kind: output, shape index: {}]  }
   0x1   :  { %v34_v0 = vld [vmem:[%s903_s2] sm:$0xff]  ;;  %v35_v1 = vld [vmem:[%s903_s2 + $0x8] sm:$0xff]  ;;  %v36_v2 = vld [vmem:[%s903_s2 + $0x10] sm:$0xff]  ;;  %671 = vset.pattern.permute.xlu0 %v696_v6 }
   0x2   :  { %v586_v3 = vpack.c.bf16 %v35_v1, %v34_v0  ;;  %vm737_vm1 = vmpackc.low %vm57_vm0, %vm57_vm0  ;;  %v37_v5 = vld [vmem:[%s903_s2 + $0x18] sm:$0xff]  ;;  %v18_v8 = vld [vmem:[%s902_s1] sm:$0xff] }
   0x3   :  { %v592_v7 = vpack.c.bf16 %v37_v5, %v36_v2  ;;  %v38_v9 = vld [vmem:[%s903_s2 + $0x20] sm:$0xff]  ;;  %v39_v10 = vld [vmem:[%s903_s2 + $0x28] sm:$0xff]  ;;  %527 = vmatprep.mubr.msk.f32.mxu0 %vm57_vm0, %v18_v8 }
   0x4   :  { %588 = vmatprep.subr.msk.bf16.mxu0 %vm737_vm1, %v586_v3  ;;  %v598_v11 = vpack.c.bf16 %v39_v10, %v38_v9  ;;  %v301_v12 = vld [vmem:[%s901_s0] sm:$0xff] }
   0x5   :  { %591 = vmatpush3.bf16.xpose.msk.msra.mxu0 %vm737_vm1, %v586_v3 }
   0x6   :  { %594 = vmatprep.subr.msk.bf16.mxu0 %vm737_vm1, %v592_v7 }
   0x7   :  { %9 = vsyncpa [#allocation3], 0  ;;  %304 = vperm.xlu0 %671, %v301_v12   ;;  %v302_v13 = vld [vmem:[%s901_s0 + $0x8] sm:$0xff]  ;;  %v40_v14 = vld [vmem:[%s903_s2 + $0x30] sm:$0xff]  ;;  %v299_v44 = vlaneseq  ;;  %v697_v47 = vmov 1.0  }
   0x8   :  { %v41_v15 = vld [vmem:[%s903_s2 + $0x38] sm:$0xff]  ;;  %v42_v17 = vld [vmem:[%s903_s2 + $0x40] sm:$0xff]  ;;  %v43_v18 = vld [vmem:[%s903_s2 + $0x48] sm:$0xff] }
   0x9   :  { %v604_v16 = vpack.c.bf16 %v41_v15, %v40_v14  ;;  %v610_v19 = vpack.c.bf16 %v43_v18, %v42_v17  ;;  %v44_v20 = vld [vmem:[%s903_s2 + $0x50] sm:$0xff]  ;;  %v45_v21 = vld [vmem:[%s903_s2 + $0x58] sm:$0xff]  ;;  %v46_v23 = vld [vmem:[%s903_s2 + $0x60] sm:$0xff]  ;;  %v882_v45 = vand.u32 127, %v299_v44 }
   0xa   :  { %v616_v22 = vpack.c.bf16 %v45_v21, %v44_v20  ;;  %v47_v24 = vld [vmem:[%s903_s2 + $0x68] sm:$0xff]  ;;  %v48_v26 = vld [vmem:[%s903_s2 + $0x70] sm:$0xff]  ;;  %v49_v27 = vld [vmem:[%s903_s2 + $0x78] sm:$0xff] }
   0xb   :  { %307 = vperm.xlu0 %671, %v302_v13   ;;  %v622_v25 = vpack.c.bf16 %v47_v24, %v46_v23  ;;  %v628_v28 = vpack.c.bf16 %v49_v27, %v48_v26  ;;  %v19_v29 = vld [vmem:[%s902_s1 + $0x8] sm:$0xff]  ;;  %v20_v30 = vld [vmem:[%s902_s1 + $0x10] sm:$0xff]  ;;  %v21_v31 = vld [vmem:[%s902_s1 + $0x18] sm:$0xff] }
   0xc   :  { %v22_v32 = vld [vmem:[%s902_s1 + $0x20] sm:$0xff]  ;;  %v23_v33 = vld [vmem:[%s902_s1 + $0x28] sm:$0xff]  ;;  %v24_v34 = vld [vmem:[%s902_s1 + $0x30] sm:$0xff] }
   0xd   :  { %597 = vmatpush3.bf16.xpose.msk.msra.mxu0 %vm737_vm1, %v592_v7  ;;  %v25_v35 = vld [vmem:[%s902_s1 + $0x38] sm:$0xff]  ;;  %v26_v36 = vld [vmem:[%s902_s1 + $0x40] sm:$0xff]  ;;  %v27_v37 = vld [vmem:[%s902_s1 + $0x48] sm:$0xff] }
   0xe   :  { %600 = vmatprep.subr.msk.bf16.mxu0 %vm737_vm1, %v598_v11  ;;  %v28_v38 = vld [vmem:[%s902_s1 + $0x50] sm:$0xff]  ;;  %v29_v39 = vld [vmem:[%s902_s1 + $0x58] sm:$0xff]  ;;  %v30_v40 = vld [vmem:[%s902_s1 + $0x60] sm:$0xff] }
   0xf   :  { %v31_v41 = vld [vmem:[%s902_s1 + $0x68] sm:$0xff]  ;;  %v32_v42 = vld [vmem:[%s902_s1 + $0x70] sm:$0xff]  ;;  %v33_v43 = vld [vmem:[%s902_s1 + $0x78] sm:$0xff]  ;;  %s698_s1 = smov [#allocation2]  }
  0x10   :  { %v408_v48 = vld [vmem:[%s904_s3] ss:$0 sm:$0xff]  ;;  %s397_s3 = sshll.u32 %s698_s1, 4  ;;  %s398_s3 = int_to_ptr.vmem [resolvable:$true] %s397_s3 }
  0x11   :  { %s672_s2 = scalar_lea.vmem %s398_s3, 256  ;;  %p677_p1 = scmp.lt.s32.totalorder %s398_s3, %s398_s3 }
  0x12   :  { %p673_p0 = scmp.ne.s32.totalorder %s398_s3, %s672_s2  ;;  %p678_p2 = scmp.lt.s32.totalorder %s672_s2, %s672_s2 }
  0x14   :  { %p679_p3 = por %p678_p2, %p677_p1 }
  0x15   :  { %603 = vmatpush3.bf16.xpose.msk.msra.mxu0 %vm737_vm1, %v598_v11 }
  0x16   :  { %606 = vmatprep.subr.msk.bf16.mxu0 %vm737_vm1, %v604_v16  ;;  %p680_p4 = pnand %p679_p3, %p673_p0 }
  0x1d   :  { %609 = vmatpush3.bf16.xpose.msk.msra.mxu0 %vm737_vm1, %v604_v16 }
  0x1e   :  { %612 = vmatprep.subr.msk.bf16.mxu0 %vm737_vm1, %v610_v19 }
  0x25   :  { %615 = vmatpush3.bf16.xpose.msk.msra.mxu0 %vm737_vm1, %v610_v19 }
  0x26   :  { %618 = vmatprep.subr.msk.bf16.mxu0 %vm737_vm1, %v616_v22 }
  0x2d   :  { %621 = vmatpush3.bf16.xpose.msk.msra.mxu0 %vm737_vm1, %v616_v22 }
  0x2e   :  { %624 = vmatprep.subr.msk.bf16.mxu0 %vm737_vm1, %v622_v25 }
  0x35   :  { %627 = vmatpush3.bf16.xpose.msk.msra.mxu0 %vm737_vm1, %v622_v25 }
  0x36   :  { %630 = vmatprep.subr.msk.bf16.mxu0 %vm737_vm1, %v628_v28 }
  0x3d   :  { %633 = vmatpush3.bf16.xpose.msk.msra.mxu0 %vm737_vm1, %v628_v28 }
  0x44   :  { %528 = vmatmul.mubr.msk.f32.vlgmr.msra.gmra.mrb[0].mxu0 %vm57_vm0, %v19_v29 }
  0x45   :  { %530 = vmatprep.mubr.msk.f32.mxu0 %vm57_vm0, %v20_v30 }
  0x48   :  { %531 = vmatmul.mubr.msk.f32.gmra.mrb[2].mxu0 %vm57_vm0, %v21_v31 }
  0x49   :  { %533 = vmatprep.mubr.msk.f32.mxu0 %vm57_vm0, %v22_v32 }
  0x4c   :  { %534 = vmatmul.mubr.msk.f32.gmra.mrb[4].mxu0 %vm57_vm0, %v23_v33 }
  0x4d   :  { %536 = vmatprep.mubr.msk.f32.mxu0 %vm57_vm0, %v24_v34 }
  0x50   :  { %537 = vmatmul.mubr.msk.f32.gmra.mrb[6].mxu0 %vm57_vm0, %v25_v35 }
  0x51   :  { %539 = vmatprep.mubr.msk.f32.mxu0 %vm57_vm0, %v26_v36 }
  0x54   :  { %540 = vmatmul.mubr.msk.f32.gmra.mrb[8].mxu0 %vm57_vm0, %v27_v37 }
  0x55   :  { %542 = vmatprep.mubr.msk.f32.mxu0 %vm57_vm0, %v28_v38 }
  0x58   :  { %543 = vmatmul.mubr.msk.f32.gmra.mrb[10].mxu0 %vm57_vm0, %v29_v39 }
  0x59   :  { %545 = vmatprep.mubr.msk.f32.mxu0 %vm57_vm0, %v30_v40 }
  0x5c   :  { %546 = vmatmul.mubr.msk.f32.gmra.mrb[12].mxu0 %vm57_vm0, %v31_v41 }
  0x5d   :  { %548 = vmatprep.mubr.msk.f32.mxu0 %vm57_vm0, %v32_v42 }
  0x60   :  { %549 = vmatmul.mubr.msk.f32.gmra.mrb[14].mxu0 %vm57_vm0, %v33_v43 }
  0x86   :  { %v305_v46 = vpop.permute.xlu0 %304 }
  0x87   :  { %vm309_vm2 = vcmp.eq.s32.totalorder %v305_v46, %v882_v45 }
  0x88   :  { %583 = vmatprep.mubr.msk.f32.mxu1 %vm309_vm2, %v697_v47 }
  0x8a   :  { %v308_v25 = vpop.permute.xlu0 %307 }
  0x8b   :  { %vm310_vm3 = vcmp.eq.s32.totalorder %v308_v25, %v882_v45 }
 0x117   :  { %v529_v49 = vpop.f32.mrb[0].mxu0 }
 0x118   :  { %v226_v50 = vadd.f32 %v529_v49, %v408_v48  ;;  %v220_v51 = vpop.f32.mrb[1].mxu0 }
 0x119   :  { %v221_v52 = vadd.f32 %v408_v48, %v220_v51 }
 0x11b   :  { %v532_v53 = vpop.f32.mrb[2].mxu0  ;;  %v634_v54 = vpack.c.bf16 %v226_v50, %v221_v52 }
 0x11c   :  { %v236_v55 = vadd.f32 %v532_v53, %v408_v48  ;;  %v230_v56 = vpop.f32.mrb[3].mxu0 }
 0x11d   :  { %v231_v57 = vadd.f32 %v408_v48, %v230_v56  ;;  %635 = vmatprep.subr.bf16.mxu1 %v634_v54 }
 0x11e   :  { %637 = vmatpush3.bf16.msra.mxu1 %v634_v54 }
 0x11f   :  { %v638_v58 = vpack.c.bf16 %v236_v55, %v231_v57  ;;  %v535_v59 = vpop.f32.mrb[4].mxu0 }
 0x120   :  { %v246_v60 = vadd.f32 %v535_v59, %v408_v48  ;;  %v240_v61 = vpop.f32.mrb[5].mxu0 }
 0x121   :  { %v241_v62 = vadd.f32 %v408_v48, %v240_v61  ;;  %639 = vmatprep.subr.bf16.mxu1 %v638_v58 }
 0x122   :  { %641 = vmatpush3.bf16.msra.mxu1 %v638_v58 }
 0x123   :  { %v642_v63 = vpack.c.bf16 %v246_v60, %v241_v62  ;;  %v538_v0 = vpop.f32.mrb[6].mxu0 }
 0x124   :  { %v256_v1 = vadd.f32 %v538_v0, %v408_v48  ;;  %v250_v2 = vpop.f32.mrb[7].mxu0 }
 0x125   :  { %v251_v3 = vadd.f32 %v408_v48, %v250_v2  ;;  %643 = vmatprep.subr.bf16.mxu1 %v642_v63 }
 0x126   :  { %645 = vmatpush3.bf16.msra.mxu1 %v642_v63 }
 0x127   :  { %v646_v4 = vpack.c.bf16 %v256_v1, %v251_v3  ;;  %v541_v5 = vpop.f32.mrb[8].mxu0 }
 0x128   :  { %v266_v6 = vadd.f32 %v541_v5, %v408_v48  ;;  %v260_v7 = vpop.f32.mrb[9].mxu0 }
 0x129   :  { %v261_v8 = vadd.f32 %v408_v48, %v260_v7  ;;  %647 = vmatprep.subr.bf16.mxu1 %v646_v4 }
 0x12a   :  { %649 = vmatpush3.bf16.msra.mxu1 %v646_v4 }
 0x12b   :  { %v650_v9 = vpack.c.bf16 %v266_v6, %v261_v8  ;;  %v544_v10 = vpop.f32.mrb[10].mxu0 }
 0x12c   :  { %v276_v11 = vadd.f32 %v544_v10, %v408_v48  ;;  %v270_v12 = vpop.f32.mrb[11].mxu0 }
 0x12d   :  { %v271_v13 = vadd.f32 %v408_v48, %v270_v12  ;;  %651 = vmatprep.subr.bf16.mxu1 %v650_v9 }
 0x12e   :  { %653 = vmatpush3.bf16.msra.mxu1 %v650_v9 }
 0x12f   :  { %v654_v14 = vpack.c.bf16 %v276_v11, %v271_v13  ;;  %v547_v15 = vpop.f32.mrb[12].mxu0 }
 0x130   :  { %v286_v16 = vadd.f32 %v547_v15, %v408_v48  ;;  %v280_v17 = vpop.f32.mrb[13].mxu0 }
 0x131   :  { %v281_v18 = vadd.f32 %v408_v48, %v280_v17  ;;  %655 = vmatprep.subr.bf16.mxu1 %v654_v14 }
 0x132   :  { %657 = vmatpush3.bf16.msra.mxu1 %v654_v14 }
 0x133   :  { %v658_v19 = vpack.c.bf16 %v286_v16, %v281_v18  ;;  %v550_v20 = vpop.f32.mrb[14].mxu0 }
 0x134   :  { %v296_v21 = vadd.f32 %v550_v20, %v408_v48  ;;  %v290_v22 = vpop.f32.mrb[15].mxu0 }
 0x135   :  { %v291_v23 = vadd.f32 %v408_v48, %v290_v22  ;;  %659 = vmatprep.subr.bf16.mxu1 %v658_v19 }
 0x136   :  { %661 = vmatpush3.bf16.msra.mxu1 %v658_v19 }
 0x137   :  { %v662_v24 = vpack.c.bf16 %v296_v21, %v291_v23 }
 0x139   :  { %663 = vmatprep.subr.bf16.mxu1 %v662_v24 }
 0x13a   :  { %665 = vmatpush3.bf16.msra.mxu1 %v662_v24 }
 0x13d   :  { %584 = vmatmul.mubr.msk.f32.vlgmr.msra.gmra.mrb[0].mxu1 %vm310_vm3, %v697_v47 }
 0x210   :  { %v585_v26 = vpop.f32.mrb[0].mxu1 }
 0x211   :  { %391 = vst [vmem:[#allocation2 + $0x8] sm:$0xff] %v585_v26  ;;  %v381_v27 = vpop.f32.mrb[1].mxu1 }
 0x212   :  { %390 = vst [vmem:[#allocation2] sm:$0xff] %v381_v27 }
 0x213   :  { %683 = shalt.err (!%p680_p4)
}
 0x214   :  { %s684_s6 = scalar_lea.hbm %s905_s4, 256 }
 0x215   :  { %p685_p5 = scmp.ne.s32.totalorder %s905_s4, %s684_s6  ;;  %p688_p6 = scmp.lt.u32.totalorder %s684_s6, %s905_s4 }
 0x217   :  { %p690_p7 = pnand %p688_p6, %p685_p5 }
 0x219   :  { %693 = shalt.err (!%p690_p7)
}
 0x21a   :  { %s699_s11 = smov 128   ;;  %s700_s12 = smov 8  }
 0x21b   :  { %403 = dma.vmem_to_hbm [thread:$0]  %s398_s3, 256, %s905_s4, [#allocation3], %s699_s11, %s699_s11, %s700_s12  }
 0x21c   :  { %694 = dma.done.wait [#allocation3], 256  }
 0x21d   :  { %695 = vsyncadd [#allocation3], 4294967040 }
 0x21e   :  { %407 = vsyncpa [#allocation3], 1 }

</bundles_post_ra>
